<compile_context>
chip_gen: v5e
topology: v5e:2x2
jax: 0.10.0
libtpu: 0.0.40
codegen_flags: <defaults>
</compile_context>

<pallas_src>
import functools

import jax
import jax.numpy as jnp
from jax import lax
from jax.experimental import pallas as pl
from jax.experimental.pallas import tpu as pltpu

D_IN, D_H, D_OUT = 180, 32, 2
_SUB_B = 512  # rows per fused compute sub-block inside a tile


def _round_up(n, m):
    return (n + m - 1) // m * m


def _make_mlp_kernel(tb, sb):
    """Build the fused-MLP kernel for a (tb)-row tile walked in (sb)-row chunks."""
    assert tb % sb == 0 and sb % 8 == 0
    nsb = tb // sb

    def kernel(x_ref, w1_ref, b1_ref, w2_ref, b2_ref, w3_ref, b3_ref, o_ref):
        # Tiny, VMEM-resident weights: load once per tile.
        w1 = w1_ref[...]
        b1 = b1_ref[...]
        w2 = w2_ref[...]
        b2 = b2_ref[...]
        w3 = w3_ref[...]
        b3 = b3_ref[...]

        def compute(r0):
            xb = x_ref[pl.ds(r0, sb), :]
            if xb.dtype != jnp.bfloat16:          # free in-register cast (f32 input path)
                xb = xb.astype(jnp.bfloat16)
            # Linear(180 -> 32) + ReLU   (bf16 MXU operands, f32 accumulate)
            h1 = jnp.dot(xb, w1, preferred_element_type=jnp.float32) + b1
            h1 = jnp.maximum(h1, 0.0).astype(jnp.bfloat16)
            # Linear(32 -> 32) + ReLU
            h2 = jnp.dot(h1, w2, preferred_element_type=jnp.float32) + b2
            h2 = jnp.maximum(h2, 0.0).astype(jnp.bfloat16)
            # Linear(32 -> 2)
            z = jnp.dot(h2, w3, preferred_element_type=jnp.float32) + b3
            # LogSoftmax over the last dim (numerically stable, f32)
            m = jnp.max(z, axis=-1, keepdims=True)
            lse = jnp.log(jnp.sum(jnp.exp(z - m), axis=-1, keepdims=True)) + m
            o_ref[pl.ds(r0, sb), :] = (z - lse).astype(o_ref.dtype)

        if nsb == 1:
            compute(0)
        else:
            def body(s, carry):
                compute(pl.multiple_of(s * sb, sb))
                return carry
            lax.fori_loop(0, nsb, body, 0, unroll=True)

    return kernel


def _choose_tile(B, tile_b):
    """Pick the batch-tile size TB (multiple of 8, compatible with _SUB_B)."""
    TB = min(tile_b, _round_up(B, 8))
    # If the whole batch would be a single tile, split it so a "parallel" grid
    # can actually feed both TensorCores on v7x.
    if B > 8 and TB >= B:
        TB = _round_up(pl.cdiv(B, 2), 8)
    # The in-kernel sub-block loop needs TB % SB == 0.
    if TB > _SUB_B:
        TB = (TB // _SUB_B) * _SUB_B
    return max(TB, 8)


def _vmem_limit_bytes(TB, x_itemsize):
    lane = 128
    x_bufs = 2 * TB * _round_up(D_IN, lane) * x_itemsize  # double-buffered, lane-padded x
    o_bufs = 2 * TB * lane * 4                            # double-buffered, lane-padded out
    slack = 8 << 20                                       # weights + compiler temps + headroom
    return max(32 << 20, x_bufs + o_bufs + slack)


@functools.partial(jax.jit, static_argnames=("tile_b",))
def network_forward(x, params, tile_b=4096):
    """Forward pass of the PyTorch `Network` module. x: (B, 180), f32 or bf16."""
    w1, b1, w2, b2, w3, b3 = params
    # MXU-native operand dtype (tiny one-time casts); biases stay f32 for the epilogue.
    w1 = w1.astype(jnp.bfloat16)
    w2 = w2.astype(jnp.bfloat16)
    w3 = w3.astype(jnp.bfloat16)

    B = x.shape[0]
    TB = _choose_tile(B, tile_b)
    SB = min(_SUB_B, TB)
    grid = (pl.cdiv(B, TB),)  # ragged last tile handled by the pipeline (no padding copy)

    const2d = lambda i: (0, 0)  # weights/biases: VMEM-resident across all grid steps

    out = pl.pallas_call(
        _make_mlp_kernel(TB, SB),
        out_shape=jax.ShapeDtypeStruct((B, D_OUT), jnp.float32),
        grid=grid,
        in_specs=[
            pl.BlockSpec((TB, D_IN), lambda i: (i, 0)),   # streamed, double-buffered x tiles
            pl.BlockSpec((D_IN, D_H), const2d),
            pl.BlockSpec((1, D_H), const2d),
            pl.BlockSpec((D_H, D_H), const2d),
            pl.BlockSpec((1, D_H), const2d),
            pl.BlockSpec((D_H, D_OUT), const2d),
            pl.BlockSpec((1, D_OUT), const2d),
        ],
        out_specs=pl.BlockSpec((TB, D_OUT), lambda i: (i, 0)),
        compiler_params=pltpu.CompilerParams(
            dimension_semantics=("parallel",),  # v7x: shard batch tiles across both TCs
            vmem_limit_bytes=_vmem_limit_bytes(TB, jnp.dtype(x.dtype).itemsize),
        ),
    )(x, w1, b1, w2, b2, w3, b3)
    return out


def init_params(key):
    """Deterministic init mimicking PyTorch Linear default: U(-1/sqrt(fan_in), +1/sqrt(fan_in))."""
    ks = jax.random.split(key, 6)

    def lin(kw, kb, fan_in, fan_out):
        bound = 1.0 / jnp.sqrt(float(fan_in))
        w = jax.random.uniform(kw, (fan_in, fan_out), jnp.float32, -bound, bound)
        b = jax.random.uniform(kb, (1, fan_out), jnp.float32, -bound, bound)
        return w, b

    w1, b1 = lin(ks[0], ks[1], D_IN, D_H)
    w2, b2 = lin(ks[2], ks[3], D_H, D_H)
    w3, b3 = lin(ks[4], ks[5], D_H, D_OUT)
    return (w1, b1, w2, b2, w3, b3)


def reference_forward_f32(x, params):
    """Pure f32 reference (exact semantics of the PyTorch module)."""
    w1, b1, w2, b2, w3, b3 = params
    h1 = jnp.maximum(x @ w1 + b1, 0.0)
    h2 = jnp.maximum(h1 @ w2 + b2, 0.0)
    z = h2 @ w3 + b3
    return jax.nn.log_softmax(z, axis=-1)


def reference_forward_mxu(x, params):
    """Reference mirroring the kernel's bf16-operand / f32-accumulate matmuls exactly."""
    w1, b1, w2, b2, w3, b3 = params
    bf = jnp.bfloat16
    xb = x.astype(bf)
    h1 = jnp.dot(xb, w1.astype(bf), preferred_element_type=jnp.float32) + b1
    h1 = jnp.maximum(h1, 0.0).astype(bf)
    h2 = jnp.dot(h1, w2.astype(bf), preferred_element_type=jnp.float32) + b2
    h2 = jnp.maximum(h2, 0.0).astype(bf)
    z = jnp.dot(h2, w3.astype(bf), preferred_element_type=jnp.float32) + b3
    return jax.nn.log_softmax(z, axis=-1)


if __name__ == "__main__":
    key = jax.random.PRNGKey(0)
    k_x, k_p = jax.random.split(key)
    batch = 10  # not a multiple of the tile -> exercises the ragged-last-tile path
    x_f32 = jax.random.normal(k_x, (batch, D_IN), dtype=jnp.float32)
    params = init_params(k_p)

    # Preferred production path: producer emits x in bf16 (halves the dominant
    # HBM read). The kernel also accepts f32 x (cast happens in-register).
    x_bf16 = x_f32.astype(jnp.bfloat16)

    out = jax.block_until_ready(network_forward(x_bf16, params))
    assert out.shape == (batch, D_OUT)
    assert bool(jnp.all(jnp.isfinite(out)))

    # Tight check against a reference using identical bf16-operand matmuls.
    ref_mxu = reference_forward_mxu(x_bf16, params)
    assert jnp.allclose(out, ref_mxu, atol=1e-3, rtol=1e-3), \
        float(jnp.max(jnp.abs(out - ref_mxu)))
    # Loose check against the exact f32 module semantics (bf16 rounding only).
    ref_f32 = reference_forward_f32(x_bf16.astype(jnp.float32), params)
    assert jnp.allclose(out, ref_f32, atol=2e-2, rtol=2e-2), \
        float(jnp.max(jnp.abs(out - ref_f32)))
    # Rows of a log-softmax must exponentiate-sum to 1.
    assert jnp.allclose(jnp.sum(jnp.exp(out), axis=-1), 1.0, atol=1e-3)

    print("KERNEL_OK")
</pallas_src>

<mosaic_0001>
module attributes {stable_mosaic.version = 11 : i64} {
  func.func @kernel(%arg0: i32, %arg1: memref<8x180xbf16, #tpu.memory_space<vmem>>, %arg2: memref<180x32xbf16, #tpu.memory_space<vmem>>, %arg3: memref<1x32xf32, #tpu.memory_space<vmem>>, %arg4: memref<32x32xbf16, #tpu.memory_space<vmem>>, %arg5: memref<1x32xf32, #tpu.memory_space<vmem>>, %arg6: memref<32x2xbf16, #tpu.memory_space<vmem>>, %arg7: memref<1x2xf32, #tpu.memory_space<vmem>>, %arg8: memref<8x2xf32, #tpu.memory_space<vmem>>) attributes {dimension_semantics = [#tpu.dimension_semantics<parallel>], iteration_bounds = array<i64: 2>, scalar_prefetch = 0 : i64, scratch_operands = 0 : i64, tpu.core_type = #tpu.core_type<tc>, window_params = [{transform_indices = @transform_0, window_bounds = array<i64: 8, 180>}, {pipeline_mode = #tpu.pipeline_mode<synchronous>, transform_indices = @transform_1, window_bounds = array<i64: 180, 32>}, {pipeline_mode = #tpu.pipeline_mode<synchronous>, transform_indices = @transform_2, window_bounds = array<i64: 1, 32>}, {pipeline_mode = #tpu.pipeline_mode<synchronous>, transform_indices = @transform_3, window_bounds = array<i64: 32, 32>}, {pipeline_mode = #tpu.pipeline_mode<synchronous>, transform_indices = @transform_4, window_bounds = array<i64: 1, 32>}, {pipeline_mode = #tpu.pipeline_mode<synchronous>, transform_indices = @transform_5, window_bounds = array<i64: 32, 2>}, {pipeline_mode = #tpu.pipeline_mode<synchronous>, transform_indices = @transform_6, window_bounds = array<i64: 1, 2>}, {transform_indices = @transform_7, window_bounds = array<i64: 8, 2>}]} {
    %c0 = arith.constant 0 : index
    %c0_0 = arith.constant 0 : index
    %0 = vector.load %arg2[%c0, %c0_0] : memref<180x32xbf16, #tpu.memory_space<vmem>>, vector<180x32xbf16>
    %c0_1 = arith.constant 0 : index
    %c0_2 = arith.constant 0 : index
    %1 = vector.load %arg3[%c0_1, %c0_2] : memref<1x32xf32, #tpu.memory_space<vmem>>, vector<1x32xf32>
    %c0_3 = arith.constant 0 : index
    %c0_4 = arith.constant 0 : index
    %2 = vector.load %arg4[%c0_3, %c0_4] : memref<32x32xbf16, #tpu.memory_space<vmem>>, vector<32x32xbf16>
    %c0_5 = arith.constant 0 : index
    %c0_6 = arith.constant 0 : index
    %3 = vector.load %arg5[%c0_5, %c0_6] : memref<1x32xf32, #tpu.memory_space<vmem>>, vector<1x32xf32>
    %c0_7 = arith.constant 0 : index
    %c0_8 = arith.constant 0 : index
    %4 = vector.load %arg6[%c0_7, %c0_8] : memref<32x2xbf16, #tpu.memory_space<vmem>>, vector<32x2xbf16>
    %c0_9 = arith.constant 0 : index
    %c0_10 = arith.constant 0 : index
    %5 = vector.load %arg7[%c0_9, %c0_10] : memref<1x2xf32, #tpu.memory_space<vmem>>, vector<1x2xf32>
    %c0_11 = arith.constant 0 : index
    %c0_12 = arith.constant 0 : index
    %6 = vector.load %arg1[%c0_11, %c0_12] : memref<8x180xbf16, #tpu.memory_space<vmem>>, vector<8x180xbf16>
    %cst = arith.constant dense<0.000000e+00> : vector<8x32xf32>
    %7 = tpu.matmul %6, %0, %cst {dimension_numbers = #tpu.dot_dimension_numbers<[1], [0], [0], [1], [0, 0, 1, 1], [], []>} : vector<8x180xbf16>, vector<180x32xbf16>, vector<8x32xf32> -> vector<8x32xf32>
    %8 = vector.broadcast %1 : vector<1x32xf32> to vector<8x32xf32>
    %9 = arith.addf %7, %8 : vector<8x32xf32>
    %cst_13 = arith.constant 0.000000e+00 : f32
    %10 = vector.broadcast %cst_13 : f32 to vector<8x32xf32>
    %11 = arith.maximumf %9, %10 : vector<8x32xf32>
    %12 = arith.truncf %11 : vector<8x32xf32> to vector<8x32xbf16>
    %cst_14 = arith.constant dense<0.000000e+00> : vector<8x32xf32>
    %13 = tpu.matmul %12, %2, %cst_14 {dimension_numbers = #tpu.dot_dimension_numbers<[1], [0], [0], [1], [0, 0, 1, 1], [], []>} : vector<8x32xbf16>, vector<32x32xbf16>, vector<8x32xf32> -> vector<8x32xf32>
    %14 = vector.broadcast %3 : vector<1x32xf32> to vector<8x32xf32>
    %15 = arith.addf %13, %14 : vector<8x32xf32>
    %cst_15 = arith.constant 0.000000e+00 : f32
    %16 = vector.broadcast %cst_15 : f32 to vector<8x32xf32>
    %17 = arith.maximumf %15, %16 : vector<8x32xf32>
    %18 = arith.truncf %17 : vector<8x32xf32> to vector<8x32xbf16>
    %cst_16 = arith.constant dense<0.000000e+00> : vector<8x2xf32>
    %19 = tpu.matmul %18, %4, %cst_16 {dimension_numbers = #tpu.dot_dimension_numbers<[1], [0], [0], [1], [0, 0, 1, 1], [], []>} : vector<8x32xbf16>, vector<32x2xbf16>, vector<8x2xf32> -> vector<8x2xf32>
    %20 = vector.broadcast %5 : vector<1x2xf32> to vector<8x2xf32>
    %21 = arith.addf %19, %20 : vector<8x2xf32>
    %cst_17 = arith.constant dense<0xFF800000> : vector<8xf32>
    %22 = vector.multi_reduction <maximumf>, %21, %cst_17 [1] : vector<8x2xf32> to vector<8xf32>
    %23 = vector.shape_cast %22 : vector<8xf32> to vector<8x1xf32>
    %24 = vector.broadcast %23 : vector<8x1xf32> to vector<8x2xf32>
    %25 = arith.subf %21, %24 : vector<8x2xf32>
    %26 = math.exp %25 : vector<8x2xf32>
    %cst_18 = arith.constant dense<0.000000e+00> : vector<8xf32>
    %27 = vector.multi_reduction <add>, %26, %cst_18 [1] : vector<8x2xf32> to vector<8xf32>
    %28 = vector.shape_cast %27 : vector<8xf32> to vector<8x1xf32>
    %29 = math.log %28 : vector<8x1xf32>
    %30 = arith.addf %29, %23 : vector<8x1xf32>
    %31 = vector.broadcast %30 : vector<8x1xf32> to vector<8x2xf32>
    %32 = arith.subf %21, %31 : vector<8x2xf32>
    %c0_19 = arith.constant 0 : index
    %c0_20 = arith.constant 0 : index
    %33 = vector.load %arg8[%c0_19, %c0_20] : memref<8x2xf32, #tpu.memory_space<vmem>>, vector<8x2xf32>
    tpu.vector_store %arg8[%c0_19, %c0_20], %32 {strides = array<i32>} : memref<8x2xf32, #tpu.memory_space<vmem>>, vector<8x2xf32>,
    return
  }
  func.func @transform_0(%arg0: i32) -> (i32, i32) {
    %c0_i32 = arith.constant 0 : i32
    %c0_i32_0 = arith.constant 0 : i32
    return %arg0, %c0_i32 : i32, i32
  }
  func.func @transform_1(%arg0: i32) -> (i32, i32) {
    %c0_i32 = arith.constant 0 : i32
    %c0_i32_0 = arith.constant 0 : i32
    %c0_i32_1 = arith.constant 0 : i32
    return %c0_i32, %c0_i32_0 : i32, i32
  }
  func.func @transform_2(%arg0: i32) -> (i32, i32) {
    %c0_i32 = arith.constant 0 : i32
    %c0_i32_0 = arith.constant 0 : i32
    %c0_i32_1 = arith.constant 0 : i32
    return %c0_i32, %c0_i32_0 : i32, i32
  }
  func.func @transform_3(%arg0: i32) -> (i32, i32) {
    %c0_i32 = arith.constant 0 : i32
    %c0_i32_0 = arith.constant 0 : i32
    %c0_i32_1 = arith.constant 0 : i32
    return %c0_i32, %c0_i32_0 : i32, i32
  }
  func.func @transform_4(%arg0: i32) -> (i32, i32) {
    %c0_i32 = arith.constant 0 : i32
    %c0_i32_0 = arith.constant 0 : i32
    %c0_i32_1 = arith.constant 0 : i32
    return %c0_i32, %c0_i32_0 : i32, i32
  }
  func.func @transform_5(%arg0: i32) -> (i32, i32) {
    %c0_i32 = arith.constant 0 : i32
    %c0_i32_0 = arith.constant 0 : i32
    %c0_i32_1 = arith.constant 0 : i32
    return %c0_i32, %c0_i32_0 : i32, i32
  }
  func.func @transform_6(%arg0: i32) -> (i32, i32) {
    %c0_i32 = arith.constant 0 : i32
    %c0_i32_0 = arith.constant 0 : i32
    %c0_i32_1 = arith.constant 0 : i32
    return %c0_i32, %c0_i32_0 : i32, i32
  }
  func.func @transform_7(%arg0: i32) -> (i32, i32) {
    %c0_i32 = arith.constant 0 : i32
    %c0_i32_0 = arith.constant 0 : i32
    return %arg0, %c0_i32 : i32, i32
  }
}

</mosaic_0001>

<bundles_post_ra>
// kernel: network_forward.1
= control target key start
LH: loop header
LB: loop body
LE: loop exit
PB: predicated region body
PF: predicated region fallthrough
CT: control target
= control target key end

     0   :  { %s712_s24 = smov 0   ;;  %s796_s0 = inlined_call_operand.vmem [shape: bf16[10,180], index: 0, kind: input, shape index: {}]   ;;  %s797_s1 = inlined_call_operand.vmem [shape: bf16[180,32], index: 1, kind: input, shape index: {}]   ;;  %s798_s2 = inlined_call_operand.vmem [shape: f32[1,32], index: 2, kind: input, shape index: {}]   ;;  %s799_s3 = inlined_call_operand.vmem [shape: bf16[32,32], index: 3, kind: input, shape index: {}]   ;;  %s800_s4 = inlined_call_operand.vmem [shape: f32[1,32], index: 4, kind: input, shape index: {}]   ;;  %s801_s5 = inlined_call_operand.vmem [shape: bf16[32,2], index: 5, kind: input, shape index: {}]   ;;  %s802_s6 = inlined_call_operand.vmem [shape: f32[1,2], index: 6, kind: input, shape index: {}]   ;;  %s803_s7 = inlined_call_operand.vmem [shape: f32[10,2], index: 7, kind: output, shape index: {}]  }
   0x1 LB: > { %s560_s25 = sadd.s32 4294967295, %s670_s24   ;;  %p564_p0 = scmp.ge.s32.totalorder %s670_s24, 1  ;;  %s670_s24 = sphi %s712_s24, %s17_s24  }
   0x2   : > { %p237_p1 = scmp.lt.s32.totalorder %s670_s24, 3 }
   0x4   : > { %p238_p2 = pnand %p564_p0, %p237_p1 }
   0x5   : > { %p268_p3 = scmp.lt.s32.totalorder (!%p238_p2), %s560_s25, 1 }
   0x6   : > { %241 = sbr.rel (%p238_p2) target bundleno = 708 (0x2c4), region = 48 }
   0xb   : > { %v641_v0 = vld [vmem:[%s797_s1 + $0x38] sm:$0xff]  ;;  %v640_v2 = vld [vmem:[%s797_s1 + $0x30] sm:$0xff]  ;;  %s805_s25 = smov (!%p268_p3, %s560_s25), 1  ;;  %vm395_vm0 = vcmask 1041408   ;;  %v639_v5 = vld [vmem:[%s797_s1 + $0x28] sm:$0xff]  ;;  %vm391_vm1 = vcmask 424960  }
   0xc   : > { %v300_v1 = vld [vmem:[%s797_s1 + $0x58] sm:$0x3]  ;;  %399 = vmatpush.bf16.msra.mxu0 %v641_v0  ;;  %s633_s9 = sshll.u32 %s805_s25, 3  ;;  %v644_v7 = vld [vmem:[%s797_s1 + $0x50] sm:$0xff]  ;;  %v638_v8 = vld [vmem:[%s797_s1 + $0x20] sm:$0xff]  ;;  %vm442_vm2 = vcmask 261120  }
   0xd   : > { %v367_v3 = vunpack.c.l.b16 %v300_v1  ;;  %s272_s16 = scalar_lea.vmem %s796_s0, %s633_s9  ;;  %v643_v9 = vld [vmem:[%s797_s1 + $0x48] sm:$0xff]  ;;  %v637_v11 = vld [vmem:[%s797_s1 + $0x18] sm:$0xff]  ;;  %v642_v13 = vld [vmem:[%s797_s1 + $0x40] sm:$0xff]  ;;  %vm492_vm3 = vcmask 15360   ;;  %s276_s29 = scalar_lea.vmem %s803_s7, %s633_s9 }
   0xe   : > { %v312_v10 = vld [vmem:[%s272_s16] sm:$0xff]  ;;  %v636_v14 = vld [vmem:[%s797_s1 + $0x10] sm:$0xff]  ;;  %v635_v16 = vld [vmem:[%s797_s1 + $0x8] sm:$0xff] }
   0xf   : > { %v379_v4 = vpack.c.b16 %v367_v3, %v367_v3  ;;  %v318_v12 = vunpack.c.h.b16 %v312_v10  ;;  %v317_v17 = vunpack.c.l.b16 %v312_v10  ;;  %v634_v18 = vld [vmem:[%s797_s1] sm:$0xff]  ;;  %v646_v20 = vld [vmem:[%s799_s3 + $0x8] sm:$0xff] }
  0x10   : > { %400 = vmatpush.bf16.msra.mxu0 %v640_v2  ;;  %452 = vmatpush.bf16.msra.mxu2 %v646_v20  ;;  %v645_v21 = vld [vmem:[%s799_s3] sm:$0xff]  ;;  %v648_v31 = vld [vmem:[%s801_s5 + $0x8] sm:$0xff] }
  0x11   : > { %v397_v6 = vsel %vm395_vm0, %v379_v4, 0  ;;  %v320_v15 = vpack.c.b16 %v318_v12, %v318_v12  ;;  %v319_v19 = vpack.c.b16 %v317_v17, %v317_v17  ;;  %v657_v23 = vld [vmem:[%s798_s2] ss:$0 sm:$0xff]  ;;  %485 = vmatpush.bf16.msra.mxu3 %v648_v31 }
  0x12   : > { %416 = vmatpush.bf16.msra.mxu1 %v397_v6  ;;  %v647_v32 = vld [vmem:[%s801_s5] sm:$0xff] }
  0x13   : > { %v658_v33 = vld [vmem:[%s800_s4] ss:$0 sm:$0xff] }
  0x14   : > { %401 = vmatpush.bf16.msra.mxu0 %v639_v5  ;;  %453 = vmatpush.bf16.msra.mxu2 %v645_v21  ;;  %v659_v39 = vld [vmem:[%s802_s6] ss:$0 sm:$0xff] }
  0x15   : > { %486 = vmatpush.bf16.msra.mxu3 %v647_v32 }
  0x16   : > { %417 = vmatpush.bf16.msra.mxu1 %v644_v7 }
  0x18   : > { %402 = vmatpush.bf16.msra.mxu0 %v638_v8 }
  0x1a   : > { %418 = vmatpush.bf16.msra.mxu1 %v643_v9 }
  0x1c   : > { %403 = vmatpush.bf16.msra.mxu0 %v637_v11 }
  0x1e   : > { %419 = vmatpush.bf16.msra.mxu1 %v642_v13 }
  0x20   : > { %404 = vmatpush.bf16.msra.mxu0 %v636_v14 }
  0x21   : > { %612 = vmatmul.msk.bf16.vlgmr.msra.gmra.mxu1 %vm391_vm1, %v320_v15 }
  0x24   : > { %405 = vmatpush.bf16.msra.mxu0 %v635_v16 }
  0x28   : > { %406 = vmatpush.bf16.msra.mxu0 %v634_v18 }
  0x2b   : > { %407 = vmatmul.bf16.vlgmr.msra.gmra.mxu0 %v319_v19 }
  0x9e   : > { %v421_v22 = vpop.f32.mrf.mxu1 }
  0xa6   : > { %v423_v24 = vpop.f32.mrf.mxu1 }
  0xa8   : > { %v408_v25 = vpop.f32.mrf.mxu0 }
  0xa9   : > { %v409_v26 = vadd.f32 %v657_v23, %v408_v25 }
  0xab   : > { %v422_v27 = vadd.f32 %v421_v22, %v409_v26 }
  0xad   : > { %v425_v28 = vmax.f32 %v422_v27, 0.0 }
  0xaf   : > { %v426_v29 = vpack.c.bf16 %v425_v28, %v425_v28 }
  0xb0   : > { %v410_v30 = vpop.f32.mrf.mxu0 }
  0xb1   : > { %621 = vmatmul.msk.bf16.vlgmr.msra.gmra.mxu2 %vm442_vm2, %v426_v29 }
 0x134   : > { %v455_v34 = vpop.f32.mrf.mxu2 }
 0x135   : > { %v456_v35 = vadd.f32 %v658_v33, %v455_v34 }
 0x137   : > { %v459_v36 = vmax.f32 %v456_v35, 0.0 }
 0x139   : > { %v460_v37 = vpack.c.bf16 %v459_v36, %v459_v36 }
 0x13b   : > { %630 = vmatmul.msk.bf16.vlgmr.msra.gmra.mxu3 %vm442_vm2, %v460_v37 }
 0x13c   : > { %v457_v38 = vpop.f32.mrf.mxu2 }
 0x1be   : > { %v488_v40 = vpop.f32.mrf.mxu3 }
 0x1bf   : > { %v489_v41 = vadd.f32 %v659_v39, %v488_v40 }
 0x1c1   : > { %v493_v42 = vsel %vm492_vm3, %v489_v41, -inf }
 0x1c2   : > { %494 = vmax.xlane.f32.xlu0 %v493_v42 }
 0x1c6   : > { %v490_v43 = vpop.f32.mrf.mxu3 }
 0x235   : > { %v495_v44 = vpop.xlane.xlu0 %494 }
 0x236   : > { %v496_v45 = vsub.f32 %v489_v41, %v495_v44 }
 0x238   : > { %v497_v46 = vmul.f32 1.442695, %v496_v45 }
 0x23a   : > { %660 = vpow2.f32 %v497_v46 }
 0x240   : > { %v661_v47 = vpop.eup %660 }
 0x241   : > { %v499_v48 = vsel %vm492_vm3, %v661_v47, 0.0 }
 0x242   : > { %500 = vadd.xlane.f32.xlu0 %v499_v48 }
 0x2b5   : > { %v501_v49 = vpop.xlane.xlu0 %500 }
 0x2b6   : > { %662 = vlog2.f32 %v501_v49 }
 0x2bc   : > { %v663_v50 = vpop.eup %662 }
 0x2bd   : > { %v503_v51 = vmul.f32 0.6931472, %v663_v50 }
 0x2bf   : > { %v504_v52 = vadd.f32 %v503_v51, %v495_v44 }
 0x2c1   : > { %v505_v53 = vsub.f32 %v489_v41, %v504_v52 }
 0x2c3   : > { %506 = vst.msk [vmem:[%s276_s29] sm:$0xff] %vm492_vm3, %v505_v53 }
 0x2c4 PF: > { %s17_s24 = sadd.s32 1, %s670_s24  }
 0x2c5   : > { %p14_p4 = scmp.ge.s32.totalorder %s17_s24, 4  }
 0x2c7   :  { %16 = sbr.rel (!%p14_p4) target bundleno = 1 (0x1), region = 78 }

</bundles_post_ra>
